<compile_context>
chip_gen: v5e
topology: v5e:2x2
jax: 0.10.0
libtpu: 0.0.40
codegen_flags: <defaults>
</compile_context>

<pallas_src>
import functools

import jax
import jax.numpy as jnp
from jax.experimental import pallas as pl
from jax.experimental.pallas import tpu as pltpu

_LANE = 128      # TPU lane width (last-dim granularity)
_SUBLANE = 8     # TPU sublane granularity (second-to-last dim)
_MAX_TM = 256    # row-tile cap; VMEM-safe for v5e/v6e/v7x scoped defaults


def _round_up(x, m):
    return ((x + m - 1) // m) * m


def _mlp_kernel(x_ref, w_ref, b_ref, o_ref, *, num_layers):
    """Fused MLP forward on one tile of rows.

    x_ref: (tm, Dp)      bf16 padded input rows
    w_ref: (L, Dp, Dp)   bf16 padded stacked weights (layer l = w_ref[l])
    b_ref: (L, 1, Dp)    f32 padded stacked biases
    o_ref: (tm, Dp_out)  f32 padded output rows (Dp_out is a 128 multiple)
    """
    h = x_ref[...].astype(jnp.float32)
    for layer in range(num_layers):   # small static L -> unrolled in the body
        y = jnp.dot(h.astype(jnp.bfloat16), w_ref[layer],
                    preferred_element_type=jnp.float32)
        y = y + b_ref[layer]
        if layer < num_layers - 1:
            y = jnp.maximum(y, 0.0)
        h = y
    # Padded output lanes are exact zeros (zero weight cols + zero bias).
    o_ref[...] = h[:, : o_ref.shape[1]].astype(o_ref.dtype)


def _mlp_fused(x_pad, w_stacked, b_stacked, *, tm, dp_out, num_layers):
    """x_pad: (M_pad, Dp) bf16; w_stacked: (L, Dp, Dp) bf16; b: (L, 1, Dp) f32."""
    m_pad, dp = x_pad.shape
    num_l = w_stacked.shape[0]
    grid = (m_pad // tm,)
    kernel = functools.partial(_mlp_kernel, num_layers=num_layers)
    return pl.pallas_call(
        kernel,
        out_shape=jax.ShapeDtypeStruct((m_pad, dp_out), jnp.float32),
        grid_spec=pltpu.PrefetchScalarGridSpec(
            num_scalar_prefetch=0,
            grid=grid,
            in_specs=[
                pl.BlockSpec((tm, dp), lambda i: (i, 0)),            # row tile
                pl.BlockSpec((num_l, dp, dp), lambda i: (0, 0, 0)),  # all weights
                pl.BlockSpec((num_l, 1, dp), lambda i: (0, 0, 0)),   # all biases
            ],
            out_specs=pl.BlockSpec((tm, dp_out), lambda i: (i, 0)),
        ),
        compiler_params=pltpu.CompilerParams(
            dimension_semantics=("parallel",),   # shards row tiles across TCs
        ),
    )(x_pad, w_stacked, b_stacked)


class MLPPallas:
    """Pallas equivalent of the DETR MLP module (fused forward)."""

    def __init__(self, input_dim, hidden_dim, output_dim, num_layers, key):
        self.num_layers = num_layers
        self.input_dim = input_dim
        self.output_dim = output_dim

        h = [hidden_dim] * (num_layers - 1)
        dims_in = [input_dim] + h
        dims_out = h + [output_dim]

        # Common padded feature width: one lane-dense buffer carries every
        # layer's activation inside the kernel.
        self.dp = max(_round_up(d, _LANE) for d in dims_in + dims_out)
        self.dp_out = _round_up(output_dim, _LANE)

        self.weights_f32 = []   # unpadded, (in, out) — for the reference
        self.biases_f32 = []
        w_stack, b_stack = [], []
        for n_in, n_out in zip(dims_in, dims_out):
            key, wk, bk = jax.random.split(key, 3)
            # Deterministic init ~ Kaiming-uniform-ish (matches nn.Linear scale).
            bound = 1.0 / (n_in ** 0.5)
            w = jax.random.uniform(wk, (n_in, n_out), jnp.float32, -bound, bound)
            b = jax.random.uniform(bk, (n_out,), jnp.float32, -bound, bound)
            self.weights_f32.append(w)
            self.biases_f32.append(b)
            w_pad = jnp.zeros((self.dp, self.dp), jnp.float32).at[:n_in, :n_out].set(w)
            b_pad = jnp.zeros((1, self.dp), jnp.float32).at[0, :n_out].set(b)
            w_stack.append(w_pad)
            b_stack.append(b_pad)

        # Padded once at init; bf16 operands, biases kept f32 (added post-accum).
        self.w_stacked = jnp.stack(w_stack).astype(jnp.bfloat16)   # (L, Dp, Dp)
        self.b_stacked = jnp.stack(b_stack)                        # (L, 1, Dp)

    def __call__(self, x):
        orig_shape = x.shape
        in_dim = orig_shape[-1]
        x2d = x.reshape(-1, in_dim).astype(jnp.float32)
        m = x2d.shape[0]

        # Lane-pad features.
        if in_dim < self.dp:
            x2d = jnp.pad(x2d, ((0, 0), (0, self.dp - in_dim)))

        # Row tile: largest multiple of 8 up to _MAX_TM; pad rows to a multiple
        # of tm (never take the whole M as a single oversized block).
        m8 = _round_up(m, _SUBLANE)
        tm = min(_MAX_TM, m8)
        m_pad = _round_up(m, tm)
        if m_pad > m:
            x2d = jnp.pad(x2d, ((0, m_pad - m), (0, 0)))

        out = _mlp_fused(x2d.astype(jnp.bfloat16), self.w_stacked, self.b_stacked,
                         tm=tm, dp_out=self.dp_out, num_layers=self.num_layers)
        out = out[:m, : self.output_dim]
        return out.reshape(orig_shape[:-1] + (self.output_dim,))


def _reference_mlp(mlp, x):
    """Pure-JAX reference mirroring the kernel arithmetic (bf16 operands,
    f32 accumulation) so the structural semantics are checked tightly."""
    y = x.reshape(-1, x.shape[-1]).astype(jnp.float32)
    for i, (w, b) in enumerate(zip(mlp.weights_f32, mlp.biases_f32)):
        y = jnp.dot(y.astype(jnp.bfloat16), w.astype(jnp.bfloat16),
                    preferred_element_type=jnp.float32) + b
        if i < mlp.num_layers - 1:
            y = jnp.maximum(y, 0.0)
    return y.reshape(x.shape[:-1] + (mlp.output_dim,))


if __name__ == "__main__":
    key = jax.random.PRNGKey(0)
    pkey, xkey = jax.random.split(key)

    # Small shapes consistent with DETR's bbox-head MLP usage:
    # x: (batch, num_queries, input_dim)
    batch, num_queries = 2, 8
    input_dim, hidden_dim, output_dim, num_layers = 32, 32, 4, 3

    mlp = MLPPallas(input_dim, hidden_dim, output_dim, num_layers, pkey)
    x = jax.random.normal(xkey, (batch, num_queries, input_dim), jnp.float32)

    out = mlp(x)
    out = jax.block_until_ready(out)

    ref = _reference_mlp(mlp, x)
    assert out.shape == (batch, num_queries, output_dim), out.shape
    # bf16 matmul operands (f32 accumulation) in both kernel and reference.
    assert jnp.allclose(out, ref, atol=2e-2, rtol=2e-2), "mismatch vs reference"

    print("KERNEL_OK")
</pallas_src>

<mosaic_0001>
module attributes {stable_mosaic.version = 11 : i64} {
  func.func @_mlp_kernel(%arg0: i32, %arg1: memref<16x128xbf16, #tpu.memory_space<vmem>>, %arg2: memref<3x128x128xbf16, #tpu.memory_space<vmem>>, %arg3: memref<3x1x128xf32, #tpu.memory_space<vmem>>, %arg4: memref<16x128xf32, #tpu.memory_space<vmem>>) attributes {dimension_semantics = [#tpu.dimension_semantics<parallel>], iteration_bounds = array<i64: 1>, scalar_prefetch = 0 : i64, scratch_operands = 0 : i64, tpu.core_type = #tpu.core_type<tc>, window_params = [{transform_indices = @transform_0, window_bounds = array<i64: 16, 128>}, {pipeline_mode = #tpu.pipeline_mode<synchronous>, transform_indices = @transform_1, window_bounds = array<i64: 3, 128, 128>}, {pipeline_mode = #tpu.pipeline_mode<synchronous>, transform_indices = @transform_2, window_bounds = array<i64: 3, 1, 128>}, {transform_indices = @transform_3, window_bounds = array<i64: 16, 128>}]} {
    %c0 = arith.constant 0 : index
    %c0_0 = arith.constant 0 : index
    %0 = vector.load %arg1[%c0, %c0_0] : memref<16x128xbf16, #tpu.memory_space<vmem>>, vector<16x128xbf16>
    %1 = arith.extf %0 : vector<16x128xbf16> to vector<16x128xf32>
    %2 = arith.truncf %1 : vector<16x128xf32> to vector<16x128xbf16>
    %c0_1 = arith.constant 0 : index
    %c0_2 = arith.constant 0 : index
    %c0_3 = arith.constant 0 : index
    %3 = vector.load %arg2[%c0_1, %c0_2, %c0_3] : memref<3x128x128xbf16, #tpu.memory_space<vmem>>, vector<1x128x128xbf16>
    %4 = vector.shape_cast %3 : vector<1x128x128xbf16> to vector<128x128xbf16>
    %cst = arith.constant dense<0.000000e+00> : vector<16x128xf32>
    %5 = tpu.matmul %2, %4, %cst {dimension_numbers = #tpu.dot_dimension_numbers<[1], [0], [0], [1], [0, 0, 1, 1], [], []>} : vector<16x128xbf16>, vector<128x128xbf16>, vector<16x128xf32> -> vector<16x128xf32>
    %c0_4 = arith.constant 0 : index
    %c0_5 = arith.constant 0 : index
    %c0_6 = arith.constant 0 : index
    %6 = vector.load %arg3[%c0_4, %c0_5, %c0_6] : memref<3x1x128xf32, #tpu.memory_space<vmem>>, vector<1x1x128xf32>
    %7 = vector.shape_cast %6 : vector<1x1x128xf32> to vector<1x128xf32>
    %8 = vector.broadcast %7 : vector<1x128xf32> to vector<16x128xf32>
    %9 = arith.addf %5, %8 : vector<16x128xf32>
    %cst_7 = arith.constant 0.000000e+00 : f32
    %10 = vector.broadcast %cst_7 : f32 to vector<16x128xf32>
    %11 = arith.maximumf %9, %10 : vector<16x128xf32>
    %12 = arith.truncf %11 : vector<16x128xf32> to vector<16x128xbf16>
    %c1 = arith.constant 1 : index
    %c0_8 = arith.constant 0 : index
    %c0_9 = arith.constant 0 : index
    %13 = vector.load %arg2[%c1, %c0_8, %c0_9] : memref<3x128x128xbf16, #tpu.memory_space<vmem>>, vector<1x128x128xbf16>
    %14 = vector.shape_cast %13 : vector<1x128x128xbf16> to vector<128x128xbf16>
    %cst_10 = arith.constant dense<0.000000e+00> : vector<16x128xf32>
    %15 = tpu.matmul %12, %14, %cst_10 {dimension_numbers = #tpu.dot_dimension_numbers<[1], [0], [0], [1], [0, 0, 1, 1], [], []>} : vector<16x128xbf16>, vector<128x128xbf16>, vector<16x128xf32> -> vector<16x128xf32>
    %c1_11 = arith.constant 1 : index
    %c0_12 = arith.constant 0 : index
    %c0_13 = arith.constant 0 : index
    %16 = vector.load %arg3[%c1_11, %c0_12, %c0_13] : memref<3x1x128xf32, #tpu.memory_space<vmem>>, vector<1x1x128xf32>
    %17 = vector.shape_cast %16 : vector<1x1x128xf32> to vector<1x128xf32>
    %18 = vector.broadcast %17 : vector<1x128xf32> to vector<16x128xf32>
    %19 = arith.addf %15, %18 : vector<16x128xf32>
    %cst_14 = arith.constant 0.000000e+00 : f32
    %20 = vector.broadcast %cst_14 : f32 to vector<16x128xf32>
    %21 = arith.maximumf %19, %20 : vector<16x128xf32>
    %22 = arith.truncf %21 : vector<16x128xf32> to vector<16x128xbf16>
    %c2 = arith.constant 2 : index
    %c0_15 = arith.constant 0 : index
    %c0_16 = arith.constant 0 : index
    %23 = vector.load %arg2[%c2, %c0_15, %c0_16] : memref<3x128x128xbf16, #tpu.memory_space<vmem>>, vector<1x128x128xbf16>
    %24 = vector.shape_cast %23 : vector<1x128x128xbf16> to vector<128x128xbf16>
    %cst_17 = arith.constant dense<0.000000e+00> : vector<16x128xf32>
    %25 = tpu.matmul %22, %24, %cst_17 {dimension_numbers = #tpu.dot_dimension_numbers<[1], [0], [0], [1], [0, 0, 1, 1], [], []>} : vector<16x128xbf16>, vector<128x128xbf16>, vector<16x128xf32> -> vector<16x128xf32>
    %c2_18 = arith.constant 2 : index
    %c0_19 = arith.constant 0 : index
    %c0_20 = arith.constant 0 : index
    %26 = vector.load %arg3[%c2_18, %c0_19, %c0_20] : memref<3x1x128xf32, #tpu.memory_space<vmem>>, vector<1x1x128xf32>
    %27 = vector.shape_cast %26 : vector<1x1x128xf32> to vector<1x128xf32>
    %28 = vector.broadcast %27 : vector<1x128xf32> to vector<16x128xf32>
    %29 = arith.addf %25, %28 : vector<16x128xf32>
    %c0_21 = arith.constant 0 : index
    %c0_22 = arith.constant 0 : index
    %30 = vector.load %arg4[%c0_21, %c0_22] : memref<16x128xf32, #tpu.memory_space<vmem>>, vector<16x128xf32>
    tpu.vector_store %arg4[%c0_21, %c0_22], %29 {strides = array<i32>} : memref<16x128xf32, #tpu.memory_space<vmem>>, vector<16x128xf32>,
    return
  }
  func.func @transform_0(%arg0: i32) -> (i32, i32) {
    %c0_i32 = arith.constant 0 : i32
    %c0_i32_0 = arith.constant 0 : i32
    return %arg0, %c0_i32 : i32, i32
  }
  func.func @transform_1(%arg0: i32) -> (i32, i32, i32) {
    %c0_i32 = arith.constant 0 : i32
    %c0_i32_0 = arith.constant 0 : i32
    %c0_i32_1 = arith.constant 0 : i32
    %c0_i32_2 = arith.constant 0 : i32
    return %c0_i32, %c0_i32_0, %c0_i32_1 : i32, i32, i32
  }
  func.func @transform_2(%arg0: i32) -> (i32, i32, i32) {
    %c0_i32 = arith.constant 0 : i32
    %c0_i32_0 = arith.constant 0 : i32
    %c0_i32_1 = arith.constant 0 : i32
    %c0_i32_2 = arith.constant 0 : i32
    return %c0_i32, %c0_i32_0, %c0_i32_1 : i32, i32, i32
  }
  func.func @transform_3(%arg0: i32) -> (i32, i32) {
    %c0_i32 = arith.constant 0 : i32
    %c0_i32_0 = arith.constant 0 : i32
    return %arg0, %c0_i32 : i32, i32
  }
}

</mosaic_0001>

<bundles_post_ra>
// kernel: tpu_custom_call.1
= control target key start
LH: loop header
LB: loop body
LE: loop exit
PB: predicated region body
PF: predicated region fallthrough
CT: control target
= control target key end

     0   :  { %8 = vsyncpa [#allocation3], 0  ;;  %s630_s0 = inlined_call_operand.hbm [shape: bf16[16,128], index: 0, kind: input, shape index: {}]   ;;  %s631_s1 = inlined_call_operand.hbm [shape: bf16[3,128,128], index: 1, kind: input, shape index: {}]   ;;  %s632_s2 = inlined_call_operand.hbm [shape: f32[3,1,128], index: 2, kind: input, shape index: {}]   ;;  %s633_s3 = inlined_call_operand.hbm [shape: f32[16,128], index: 3, kind: output, shape index: {}]  }
   0x1   :  { %9 = vsyncpa [#allocation6], 0 }
   0x2   :  { %10 = vsyncpa [#allocation4], 0  ;;  %s28_s14 = sshll.u32 %s631_s1, 4  ;;  %s588_s15 = smov [#allocation5]   ;;  %s29_s14 = int_to_ptr.hbm [resolvable:$true] %s28_s14 }
   0x3   :  { %s30_s16 = sshll.u32 %s588_s15, 4  ;;  %s15_s19 = sshll.u32 %s630_s0, 4  ;;  %s31_s16 = int_to_ptr.vmem [resolvable:$true] %s30_s16  ;;  %s16_s19 = int_to_ptr.hbm [resolvable:$true] %s15_s19 }
   0x4   :  { %s589_s20 = smov 64   ;;  %s590_s21 = smov 4  }
   0x5   :  { %36 = dma.hbm_to_vmem [thread:$0]  %s29_s14, 3072, %s31_s16, [#allocation6], %s589_s20, %s589_s20, %s590_s21  }
   0x6   :  { %s591_s22 = smov [#allocation2]   ;;  %s41_s26 = sshll.u32 %s632_s2, 4  ;;  %s42_s26 = int_to_ptr.hbm [resolvable:$true] %s41_s26 }
   0x7   :  { %s17_s23 = sshll.u32 %s591_s22, 4  ;;  %s592_s1 = smov [#allocation7]   ;;  %s18_s23 = int_to_ptr.vmem [resolvable:$true] %s17_s23 }
   0x8   :  { %23 = dma.hbm_to_vmem [thread:$0]  %s16_s19, 128, %s18_s23, [#allocation3], %s589_s20, %s589_s20, %s590_s21  }
   0x9   :  { %s43_s27 = sshll.u32 %s592_s1, 4  ;;  %s593_s28 = smov 16   ;;  %s44_s27 = int_to_ptr.vmem [resolvable:$true] %s43_s27 }
   0xa   :  { %s594_s29 = smov 1  }
   0xb   :  { %49 = dma.hbm_to_vmem [thread:$0]  %s42_s26, 48, %s44_s27, [#allocation6], %s593_s28, %s593_s28, %s594_s29  }
   0xc   :  { %582 = dma.done.wait [#allocation3], 128  }
   0xd   :  { %583 = vsyncadd [#allocation3], 4294967168 }
   0xe   :  { %584 = dma.done.wait [#allocation6], 3120  }
   0xf   :  { %585 = vsyncadd [#allocation6], 4294964176  ;;  %v456_v0 = vld [vmem:[#allocation5 + $0x38] sm:$0xff]  ;;  %v455_v1 = vld [vmem:[#allocation5 + $0x30] sm:$0xff]  ;;  %s595_s0 = smov [#allocation8]   ;;  %s334_s5 = sshll.u32 %s633_s3, 4  ;;  %s335_s5 = int_to_ptr.hbm [resolvable:$true] %s334_s5 }
  0x10   :  { %138 = vmatpush.bf16.msra.mxu0 %v456_v0  ;;  %v464_v2 = vld [vmem:[#allocation5 + $0x78] sm:$0xff]  ;;  %v463_v3 = vld [vmem:[#allocation5 + $0x70] sm:$0xff]  ;;  %v454_v4 = vld [vmem:[#allocation5 + $0x28] sm:$0xff]  ;;  %s332_s2 = sshll.u32 %s595_s0, 4  ;;  %s596_s6 = smov 128   ;;  %s333_s2 = int_to_ptr.vmem [resolvable:$true] %s332_s2 }
  0x11   :  { %225 = vmatpush.bf16.msra.mxu1 %v464_v2  ;;  %v462_v5 = vld [vmem:[#allocation5 + $0x68] sm:$0xff]  ;;  %v453_v6 = vld [vmem:[#allocation5 + $0x20] sm:$0xff]  ;;  %v452_v8 = vld [vmem:[#allocation5 + $0x18] sm:$0xff]  ;;  %s597_s7 = smov 8  }
  0x12   :  { %v461_v7 = vld [vmem:[#allocation5 + $0x60] sm:$0xff]  ;;  %v451_v9 = vld [vmem:[#allocation5 + $0x10] sm:$0xff]  ;;  %v450_v10 = vld [vmem:[#allocation5 + $0x8] sm:$0xff] }
  0x13   :  { %v449_v11 = vld [vmem:[#allocation5] sm:$0xff]  ;;  %v448_v12 = vld [vmem:[#allocation2] sm:$0xff]  ;;  %v459_v14 = vld [vmem:[#allocation5 + $0x50] sm:$0xff] }
  0x14   :  { %139 = vmatpush.bf16.msra.mxu0 %v455_v1  ;;  %v460_v13 = vld [vmem:[#allocation5 + $0x58] sm:$0xff]  ;;  %v458_v15 = vld [vmem:[#allocation5 + $0x48] sm:$0xff]  ;;  %v457_v16 = vld [vmem:[#allocation5 + $0x40] sm:$0xff] }
  0x15   :  { %226 = vmatpush.bf16.msra.mxu1 %v463_v3  ;;  %v472_v17 = vld [vmem:[#allocation5 + $0xb8] sm:$0xff]  ;;  %v471_v18 = vld [vmem:[#allocation5 + $0xb0] sm:$0xff]  ;;  %v470_v19 = vld [vmem:[#allocation5 + $0xa8] sm:$0xff] }
  0x16   :  { %312 = vmatpush.bf16.msra.mxu2 %v472_v17  ;;  %v469_v20 = vld [vmem:[#allocation5 + $0xa0] sm:$0xff]  ;;  %v468_v29 = vld [vmem:[#allocation5 + $0x98] sm:$0xff]  ;;  %v467_v30 = vld [vmem:[#allocation5 + $0x90] sm:$0xff] }
  0x17   :  { %v483_v22 = vld [vmem:[#allocation7] ss:$0 sm:$0xff]  ;;  %v466_v31 = vld [vmem:[#allocation5 + $0x88] sm:$0xff]  ;;  %v484_v34 = vld [vmem:[#allocation7 + $0x1] ss:$0 sm:$0xff] }
  0x18   :  { %140 = vmatpush.bf16.msra.mxu0 %v454_v4  ;;  %v465_v32 = vld [vmem:[#allocation5 + $0x80] sm:$0xff] }
  0x19   :  { %227 = vmatpush.bf16.msra.mxu1 %v462_v5  ;;  %v485_v41 = vld [vmem:[#allocation7 + $0x2] ss:$0 sm:$0xff] }
  0x1a   :  { %313 = vmatpush.bf16.msra.mxu2 %v471_v18 }
  0x1c   :  { %141 = vmatpush.bf16.msra.mxu0 %v453_v6 }
  0x1d   :  { %228 = vmatpush.bf16.msra.mxu1 %v461_v7 }
  0x1e   :  { %314 = vmatpush.bf16.msra.mxu2 %v470_v19 }
  0x20   :  { %142 = vmatpush.bf16.msra.mxu0 %v452_v8 }
  0x21   :  { %229 = vmatpush.bf16.msra.mxu1 %v460_v13 }
  0x22   :  { %315 = vmatpush.bf16.msra.mxu2 %v469_v20 }
  0x24   :  { %143 = vmatpush.bf16.msra.mxu0 %v451_v9 }
  0x25   :  { %230 = vmatpush.bf16.msra.mxu1 %v459_v14 }
  0x26   :  { %316 = vmatpush.bf16.msra.mxu2 %v468_v29 }
  0x28   :  { %144 = vmatpush.bf16.msra.mxu0 %v450_v10 }
  0x29   :  { %231 = vmatpush.bf16.msra.mxu1 %v458_v15 }
  0x2a   :  { %317 = vmatpush.bf16.msra.mxu2 %v467_v30 }
  0x2c   :  { %145 = vmatpush.bf16.msra.mxu0 %v449_v11 }
  0x2d   :  { %232 = vmatpush.bf16.msra.mxu1 %v457_v16 }
  0x2e   :  { %318 = vmatpush.bf16.msra.mxu2 %v466_v31 }
  0x2f   :  { %146 = vmatmul.bf16.vlgmr.msra.gmra.mxu0 %v448_v12 }
  0x32   :  { %319 = vmatpush.bf16.msra.mxu2 %v465_v32 }
  0xac   :  { %v147_v21 = vpop.f32.mrf.mxu0 }
  0xad   :  { %v148_v23 = vadd.f32 %v483_v22, %v147_v21 }
  0xaf   :  { %v152_v26 = vmax.f32 %v148_v23, 0.0 }
  0xb4   :  { %v149_v24 = vpop.f32.mrf.mxu0 }
  0xb5   :  { %v150_v25 = vadd.f32 %v483_v22, %v149_v24 }
  0xb7   :  { %v153_v27 = vmax.f32 %v150_v25, 0.0 }
  0xb9   :  { %v154_v28 = vpack.c.bf16 %v153_v27, %v152_v26 }
  0xbb   :  { %233 = vmatmul.bf16.vlgmr.msra.gmra.mxu1 %v154_v28 }
 0x138   :  { %v234_v33 = vpop.f32.mrf.mxu1 }
 0x139   :  { %v235_v35 = vadd.f32 %v484_v34, %v234_v33 }
 0x13b   :  { %v239_v38 = vmax.f32 %v235_v35, 0.0 }
 0x140   :  { %v236_v36 = vpop.f32.mrf.mxu1 }
 0x141   :  { %v237_v37 = vadd.f32 %v484_v34, %v236_v36 }
 0x143   :  { %v240_v39 = vmax.f32 %v237_v37, 0.0 }
 0x145   :  { %v241_v40 = vpack.c.bf16 %v240_v39, %v239_v38 }
 0x147   :  { %320 = vmatmul.bf16.vlgmr.msra.gmra.mxu2 %v241_v40 }
 0x1ca   :  { %v321_v42 = vpop.f32.mrf.mxu2 }
 0x1cb   :  { %v322_v43 = vadd.f32 %v485_v41, %v321_v42 }
 0x1cd   :  { %326 = vst [vmem:[#allocation8] sm:$0xff] %v322_v43 }
 0x1d2   :  { %v323_v44 = vpop.f32.mrf.mxu2 }
 0x1d3   :  { %v324_v45 = vadd.f32 %v485_v41, %v323_v44 }
 0x1d5   :  { %327 = vst [vmem:[#allocation8 + $0x8] sm:$0xff] %v324_v45 }
 0x1d6   :  { %340 = dma.vmem_to_hbm [thread:$0]  %s333_s2, 256, %s335_s5, [#allocation4], %s596_s6, %s596_s6, %s597_s7  }
 0x1d7   :  { %586 = dma.done.wait [#allocation4], 256  }
 0x1d8   :  { %587 = vsyncadd [#allocation4], 4294967040 }
 0x1d9   :  { %345 = vsyncpa [#allocation3], 1 }
 0x1da   :  { %346 = vsyncpa [#allocation6], 1 }
 0x1db   :  { %347 = vsyncpa [#allocation4], 1 }

</bundles_post_ra>
